<compile_context>
chip_gen: v6e
topology: v6e:2x2x1
jax: 0.10.0
libtpu: 0.0.40
codegen_flags: <defaults>
</compile_context>

<pallas_src>
import numpy as np
import jax
import jax.numpy as jnp
from jax.experimental import pallas as pl
from jax.experimental.pallas import tpu as pltpu

LANE = 128    # vreg lane width
SUBLANE = 8   # f32 sublane count


def _round_up(n, m):
    return ((n + m - 1) // m) * m


def _cdiv(a, b):
    return (a + b - 1) // b


# ---------------------------------------------------------------------------
# Hardware / feature queries (cached, eager).
# ---------------------------------------------------------------------------

def _vmem_capacity_bytes():
    try:
        return int(pltpu.get_tpu_info().vmem_capacity_bytes)
    except Exception:
        return 64 << 20  # conservative fallback (v7x per-TC VMEM)


_BUFFERED_SINGLE_OK = None


def _single_buffer_supported():
    """Eagerly probe (once) whether pipeline_mode=pl.Buffered(1) compiles+runs.

    Uses concrete numpy inputs and block_until_ready so the result is a cached
    Python bool even if the MLP forward is later traced under jax.jit.
    """
    global _BUFFERED_SINGLE_OK
    if _BUFFERED_SINGLE_OK is None:
        try:
            def _probe(x_ref, o_ref):
                o_ref[...] = x_ref[...] + 1.0

            x = np.zeros((SUBLANE, LANE), np.float32)
            out = pl.pallas_call(
                _probe,
                out_shape=jax.ShapeDtypeStruct((SUBLANE, LANE), jnp.float32),
                grid=(1,),
                in_specs=[pl.BlockSpec((SUBLANE, LANE), lambda i: (0, 0),
                                       pipeline_mode=pl.Buffered(1))],
                out_specs=pl.BlockSpec((SUBLANE, LANE), lambda i: (0, 0)),
            )(x)
            jax.block_until_ready(out)
            _BUFFERED_SINGLE_OK = True
        except Exception:
            _BUFFERED_SINGLE_OK = False
    return _BUFFERED_SINGLE_OK


# ---------------------------------------------------------------------------
# Tiling heuristics.
# ---------------------------------------------------------------------------

def _choose_tile_b(B, H_p, vmem_cap_bytes):
    # Largest tile <= 512 rows whose live f32 intermediates (~3*tile_b*H_p*4 B)
    # stay under ~25% of the VMEM budget (matters on v7x's 64 MiB with big H).
    target = 512
    while target > 64 and 3 * target * H_p * 4 > vmem_cap_bytes // 4:
        target //= 2
    n_tiles = max(_cdiv(B, target), 1)
    # At least 2 grid steps (when B allows) so the "parallel" batch axis can be
    # split across TensorCores on megacore / v7x parts.
    if B >= 2 * SUBLANE:
        n_tiles = max(n_tiles, 2)
    # Balanced tiles: avoid a near-empty trailing tile when B is just above target.
    return _round_up(_cdiv(B, n_tiles), SUBLANE)


def _choose_num_chunks(tile_b):
    # Sub-tile the batch tile so MXU work on chunk j overlaps the tanh/bias
    # (VPU/EUP) epilogue of chunk j-1, and f32 live ranges stay small.
    for n in (4, 2):
        chunk = tile_b // n
        if tile_b % n == 0 and chunk % SUBLANE == 0 and chunk >= 64:
            return n
    return 1


# ---------------------------------------------------------------------------
# Kernel.
# ---------------------------------------------------------------------------

def _make_mlp_kernel(n_chunks, chunk_m):
    def mlp_kernel(x_ref, w1_ref, b1_ref, w2_ref, b2_ref, w3_ref, b3_ref, o_ref):
        # Weights stay in their native (MXU) dtype; biases / tanh / residual in f32.
        w1 = w1_ref[...]
        w2 = w2_ref[...]
        w3 = w3_ref[...]
        b1 = b1_ref[...].astype(jnp.float32)
        b2 = b2_ref[...].astype(jnp.float32)
        b3 = b3_ref[...].astype(jnp.float32)

        # Static unroll over M-chunks of the batch tile (starts are static,
        # sublane-aligned multiples of chunk_m -> zero-cost ref views).
        for c in range(n_chunks):
            r0 = c * chunk_m
            x = x_ref[pl.ds(r0, chunk_m), :].astype(w1.dtype)
            # layer 1 + tanh
            h = jnp.tanh(jnp.dot(x, w1, preferred_element_type=jnp.float32) + b1)
            # layer 2 + tanh, residual
            h = h + jnp.tanh(
                jnp.dot(h.astype(w2.dtype), w2,
                        preferred_element_type=jnp.float32) + b2)
            # layer 3 (no nonlinearity)
            out = jnp.dot(h.astype(w3.dtype), w3,
                          preferred_element_type=jnp.float32) + b3
            o_ref[pl.ds(r0, chunk_m), :] = out.astype(o_ref.dtype)

    return mlp_kernel


# ---------------------------------------------------------------------------
# Parameter preparation (call ONCE, outside the hot / jitted path).
# ---------------------------------------------------------------------------

def prepare_mlp_params(w1, b1, w2, b2, w3, b3, matmul_dtype=None):
    """Lane-pad + transpose the PyTorch-layout weights once.

    w_i are (out, in) as in nn.Linear; b_i are (out,).
    If `matmul_dtype` is given (e.g. jnp.bfloat16), weights are stored in that
    dtype for the MXU (f32 accumulation kept; bias/tanh/residual stay f32) —
    expect looser tolerances vs. a pure-f32 reference.

    Returns (padded_params, dims) where dims is a tuple of static Python ints.
    """
    H, Din = w1.shape
    Dout = w3.shape[0]
    Din_p = _round_up(Din, LANE)
    H_p = _round_up(H, LANE)
    Dout_p = _round_up(Dout, LANE)

    wdt = matmul_dtype if matmul_dtype is not None else w1.dtype
    # Zero padding is exact here: padded pre-activations are 0, tanh(0)=0, and
    # padded weight rows are 0, so padded lanes never contaminate real outputs.
    w1t = jnp.zeros((Din_p, H_p), wdt).at[:Din, :H].set(w1.T.astype(wdt))
    w2t = jnp.zeros((H_p, H_p), wdt).at[:H, :H].set(w2.T.astype(wdt))
    w3t = jnp.zeros((H_p, Dout_p), wdt).at[:H, :Dout].set(w3.T.astype(wdt))
    b1p = jnp.zeros((1, H_p), jnp.float32).at[0, :H].set(b1.astype(jnp.float32))
    b2p = jnp.zeros((1, H_p), jnp.float32).at[0, :H].set(b2.astype(jnp.float32))
    b3p = jnp.zeros((1, Dout_p), jnp.float32).at[0, :Dout].set(b3.astype(jnp.float32))

    _single_buffer_supported()  # warm the eager feature probe before any jit trace

    padded = (w1t, b1p, w2t, b2p, w3t, b3p)
    dims = (Din, H, Dout, Din_p, H_p, Dout_p)
    return padded, dims


# ---------------------------------------------------------------------------
# Forward pass (jit-friendly; only the activation is padded per call).
# ---------------------------------------------------------------------------

def mlp_pallas(x, padded_params, dims, *, tile_b=None):
    """x: (B, Din). padded_params/dims come from prepare_mlp_params."""
    w1t, b1p, w2t, b2p, w3t, b3p = padded_params
    Din, H, Dout, Din_p, H_p, Dout_p = dims
    B = x.shape[0]
    assert x.shape[1] == Din, "input feature dim mismatch"

    vmem_cap = int(0.85 * _vmem_capacity_bytes())

    if tile_b is None:
        tile_b = _choose_tile_b(B, H_p, vmem_cap)
    tile_b = max(SUBLANE, _round_up(min(tile_b, _round_up(B, SUBLANE)), SUBLANE))
    B_p = _round_up(B, tile_b)
    grid = (B_p // tile_b,)

    n_chunks = _choose_num_chunks(tile_b)
    chunk_m = tile_b // n_chunks

    # Per-call padding of the activation only (weights already laid out).
    if (B_p, Din_p) != (B, Din):
        xp = jnp.zeros((B_p, Din_p), x.dtype).at[:B, :Din].set(x)
    else:
        xp = x

    single_buf = _single_buffer_supported()

    # Explicit, generation-aware VMEM budget (headroom included).
    w_isz = jnp.dtype(w1t.dtype).itemsize
    x_isz = jnp.dtype(x.dtype).itemsize
    weight_bufs = 1 if single_buf else 2
    weight_bytes = ((Din_p * H_p + H_p * H_p + H_p * Dout_p) * w_isz
                    + (2 * H_p + Dout_p) * 4)
    io_bytes = 2 * tile_b * (Din_p + Dout_p) * x_isz      # double-buffered x/out tiles
    interm_bytes = 4 * chunk_m * max(H_p, Dout_p) * 4     # live f32 slabs per chunk
    needed = weight_bufs * weight_bytes + io_bytes + interm_bytes
    vmem_limit = int(min(needed * 1.3 + (4 << 20), vmem_cap))
    vmem_limit = max(vmem_limit, min(32 << 20, vmem_cap))

    full_block = lambda i: (0, 0)  # weights/biases: same full block every grid step

    def wspec(shape):
        if single_buf:
            # Constant blocks: single-buffer so they don't burn 2x VMEM.
            return pl.BlockSpec(shape, full_block, pipeline_mode=pl.Buffered(1))
        return pl.BlockSpec(shape, full_block)

    kernel = _make_mlp_kernel(n_chunks, chunk_m)

    out_p = pl.pallas_call(
        kernel,
        out_shape=jax.ShapeDtypeStruct((B_p, Dout_p), x.dtype),
        grid_spec=pltpu.PrefetchScalarGridSpec(
            num_scalar_prefetch=0,
            grid=grid,
            in_specs=[
                pl.BlockSpec((tile_b, Din_p), lambda i: (i, 0)),  # x batch tile
                wspec((Din_p, H_p)),
                wspec((1, H_p)),
                wspec((H_p, H_p)),
                wspec((1, H_p)),
                wspec((H_p, Dout_p)),
                wspec((1, Dout_p)),
            ],
            out_specs=pl.BlockSpec((tile_b, Dout_p), lambda i: (i, 0)),
        ),
        compiler_params=pltpu.CompilerParams(
            dimension_semantics=("parallel",),
            vmem_limit_bytes=vmem_limit,
        ),
    )(xp, w1t, b1p, w2t, b2p, w3t, b3p)

    # Slice away batch / lane padding (plain XLA glue).
    return out_p[:B, :Dout]


# ---------------------------------------------------------------------------
# Reference + init helpers.
# ---------------------------------------------------------------------------

def orthogonal_init(key, out_dim, in_dim, dtype=jnp.float32):
    """Deterministic orthogonal init matching nn.init.orthogonal_ semantics."""
    a = jax.random.normal(key, (max(out_dim, in_dim), min(out_dim, in_dim)), dtype)
    q, r = jnp.linalg.qr(a)
    q = q * jnp.sign(jnp.diagonal(r))
    if out_dim < in_dim:
        q = q.T
    return q[:out_dim, :in_dim].astype(dtype)


def mlp_reference(x, w1, b1, w2, b2, w3, b3):
    h = jnp.tanh(x @ w1.T + b1)
    h = h + jnp.tanh(h @ w2.T + b2)
    return h @ w3.T + b3


if __name__ == "__main__":
    key = jax.random.PRNGKey(0)
    kx, k1, k2, k3, kb1, kb2, kb3 = jax.random.split(key, 7)

    B, Din, H, Dout = 16, 16, 32, 8

    x = jax.random.normal(kx, (B, Din), jnp.float32)

    w1 = orthogonal_init(k1, H, Din)
    w2 = orthogonal_init(k2, H, H)
    w3 = orthogonal_init(k3, Dout, H)
    # deterministic small biases (PyTorch default is uniform; exact dist not required)
    b1 = jax.random.uniform(kb1, (H,), jnp.float32, -0.1, 0.1)
    b2 = jax.random.uniform(kb2, (H,), jnp.float32, -0.1, 0.1)
    b3 = jax.random.uniform(kb3, (Dout,), jnp.float32, -0.1, 0.1)

    # Weights padded / transposed ONCE, outside the per-call (jitted) path.
    padded, dims = prepare_mlp_params(w1, b1, w2, b2, w3, b3)
    forward = jax.jit(lambda xx, pp: mlp_pallas(xx, pp, dims))

    out = jax.block_until_ready(forward(x, padded))
    out2 = jax.block_until_ready(forward(x, padded))  # repeat call: no weight re-layout

    ref = mlp_reference(x, w1, b1, w2, b2, w3, b3)
    assert out.shape == (B, Dout)
    assert jnp.allclose(out, ref, atol=1e-5, rtol=1e-5), "mismatch vs reference"
    assert jnp.allclose(out2, ref, atol=1e-5, rtol=1e-5), "mismatch vs reference (2nd call)"

    print("KERNEL_OK")
</pallas_src>

<mosaic_0001>
module attributes {stable_mosaic.version = 11 : i64} {
  func.func @_probe(%arg0: i32, %arg1: memref<8x128xf32, #tpu.memory_space<vmem>>, %arg2: memref<8x128xf32, #tpu.memory_space<vmem>>) attributes {dimension_semantics = [#tpu.dimension_semantics<arbitrary>], iteration_bounds = array<i64: 1>, scalar_prefetch = 0 : i64, scratch_operands = 0 : i64, tpu.core_type = #tpu.core_type<tc>, window_params = [{pipeline_mode = #tpu.pipeline_mode<synchronous>, transform_indices = @transform_0, window_bounds = array<i64: 8, 128>}, {pipeline_mode = #tpu.pipeline_mode<synchronous>, transform_indices = @transform_1, window_bounds = array<i64: 8, 128>}]} {
    %c0 = arith.constant 0 : index
    %c0_0 = arith.constant 0 : index
    %0 = vector.load %arg1[%c0, %c0_0] : memref<8x128xf32, #tpu.memory_space<vmem>>, vector<8x128xf32>
    %cst = arith.constant 1.000000e+00 : f32
    %1 = vector.broadcast %cst : f32 to vector<8x128xf32>
    %2 = arith.addf %0, %1 : vector<8x128xf32>
    %c0_1 = arith.constant 0 : index
    %c0_2 = arith.constant 0 : index
    %3 = vector.load %arg2[%c0_1, %c0_2] : memref<8x128xf32, #tpu.memory_space<vmem>>, vector<8x128xf32>
    tpu.vector_store %arg2[%c0_1, %c0_2], %2 {strides = array<i32>} : memref<8x128xf32, #tpu.memory_space<vmem>>, vector<8x128xf32>,
    return
  }
  func.func @transform_0(%arg0: i32) -> (i32, i32) {
    %c0_i32 = arith.constant 0 : i32
    %c0_i32_0 = arith.constant 0 : i32
    %c0_i32_1 = arith.constant 0 : i32
    return %c0_i32, %c0_i32_0 : i32, i32
  }
  func.func @transform_1(%arg0: i32) -> (i32, i32) {
    %c0_i32 = arith.constant 0 : i32
    %c0_i32_0 = arith.constant 0 : i32
    %c0_i32_1 = arith.constant 0 : i32
    return %c0_i32, %c0_i32_0 : i32, i32
  }
}

module attributes {stable_mosaic.version = 11 : i64} {
  func.func @mlp_kernel(%arg0: i32, %arg1: memref<8x128xf32, #tpu.memory_space<vmem>>, %arg2: memref<128x128xf32, #tpu.memory_space<vmem>>, %arg3: memref<1x128xf32, #tpu.memory_space<vmem>>, %arg4: memref<128x128xf32, #tpu.memory_space<vmem>>, %arg5: memref<1x128xf32, #tpu.memory_space<vmem>>, %arg6: memref<128x128xf32, #tpu.memory_space<vmem>>, %arg7: memref<1x128xf32, #tpu.memory_space<vmem>>, %arg8: memref<8x128xf32, #tpu.memory_space<vmem>>) attributes {dimension_semantics = [#tpu.dimension_semantics<parallel>], iteration_bounds = array<i64: 2>, scalar_prefetch = 0 : i64, scratch_operands = 0 : i64, tpu.core_type = #tpu.core_type<tc>, window_params = [{transform_indices = @transform_0, window_bounds = array<i64: 8, 128>}, {pipeline_mode = #tpu.pipeline_mode<synchronous>, transform_indices = @transform_1, window_bounds = array<i64: 128, 128>}, {pipeline_mode = #tpu.pipeline_mode<synchronous>, transform_indices = @transform_2, window_bounds = array<i64: 1, 128>}, {pipeline_mode = #tpu.pipeline_mode<synchronous>, transform_indices = @transform_3, window_bounds = array<i64: 128, 128>}, {pipeline_mode = #tpu.pipeline_mode<synchronous>, transform_indices = @transform_4, window_bounds = array<i64: 1, 128>}, {pipeline_mode = #tpu.pipeline_mode<synchronous>, transform_indices = @transform_5, window_bounds = array<i64: 128, 128>}, {pipeline_mode = #tpu.pipeline_mode<synchronous>, transform_indices = @transform_6, window_bounds = array<i64: 1, 128>}, {transform_indices = @transform_7, window_bounds = array<i64: 8, 128>}]} {
    %c0 = arith.constant 0 : index
    %c0_0 = arith.constant 0 : index
    %0 = vector.load %arg2[%c0, %c0_0] : memref<128x128xf32, #tpu.memory_space<vmem>>, vector<128x128xf32>
    %c0_1 = arith.constant 0 : index
    %c0_2 = arith.constant 0 : index
    %1 = vector.load %arg4[%c0_1, %c0_2] : memref<128x128xf32, #tpu.memory_space<vmem>>, vector<128x128xf32>
    %c0_3 = arith.constant 0 : index
    %c0_4 = arith.constant 0 : index
    %2 = vector.load %arg6[%c0_3, %c0_4] : memref<128x128xf32, #tpu.memory_space<vmem>>, vector<128x128xf32>
    %c0_5 = arith.constant 0 : index
    %c0_6 = arith.constant 0 : index
    %3 = vector.load %arg3[%c0_5, %c0_6] : memref<1x128xf32, #tpu.memory_space<vmem>>, vector<1x128xf32>
    %c0_7 = arith.constant 0 : index
    %c0_8 = arith.constant 0 : index
    %4 = vector.load %arg5[%c0_7, %c0_8] : memref<1x128xf32, #tpu.memory_space<vmem>>, vector<1x128xf32>
    %c0_9 = arith.constant 0 : index
    %c0_10 = arith.constant 0 : index
    %5 = vector.load %arg7[%c0_9, %c0_10] : memref<1x128xf32, #tpu.memory_space<vmem>>, vector<1x128xf32>
    %c0_11 = arith.constant 0 : index
    %c0_12 = arith.constant 0 : index
    %6 = vector.load %arg1[%c0_11, %c0_12] : memref<8x128xf32, #tpu.memory_space<vmem>>, vector<8x128xf32>
    %cst = arith.constant dense<0.000000e+00> : vector<8x128xf32>
    %7 = tpu.matmul %6, %0, %cst {dimension_numbers = #tpu.dot_dimension_numbers<[1], [0], [0], [1], [0, 0, 1, 1], [], []>} : vector<8x128xf32>, vector<128x128xf32>, vector<8x128xf32> -> vector<8x128xf32>
    %8 = vector.broadcast %3 : vector<1x128xf32> to vector<8x128xf32>
    %9 = arith.addf %7, %8 : vector<8x128xf32>
    %10 = math.tanh %9 : vector<8x128xf32>
    %cst_13 = arith.constant dense<0.000000e+00> : vector<8x128xf32>
    %11 = tpu.matmul %10, %1, %cst_13 {dimension_numbers = #tpu.dot_dimension_numbers<[1], [0], [0], [1], [0, 0, 1, 1], [], []>} : vector<8x128xf32>, vector<128x128xf32>, vector<8x128xf32> -> vector<8x128xf32>
    %12 = vector.broadcast %4 : vector<1x128xf32> to vector<8x128xf32>
    %13 = arith.addf %11, %12 : vector<8x128xf32>
    %14 = math.tanh %13 : vector<8x128xf32>
    %15 = arith.addf %10, %14 : vector<8x128xf32>
    %cst_14 = arith.constant dense<0.000000e+00> : vector<8x128xf32>
    %16 = tpu.matmul %15, %2, %cst_14 {dimension_numbers = #tpu.dot_dimension_numbers<[1], [0], [0], [1], [0, 0, 1, 1], [], []>} : vector<8x128xf32>, vector<128x128xf32>, vector<8x128xf32> -> vector<8x128xf32>
    %17 = vector.broadcast %5 : vector<1x128xf32> to vector<8x128xf32>
    %18 = arith.addf %16, %17 : vector<8x128xf32>
    %c0_15 = arith.constant 0 : index
    %c0_16 = arith.constant 0 : index
    %19 = vector.load %arg8[%c0_15, %c0_16] : memref<8x128xf32, #tpu.memory_space<vmem>>, vector<8x128xf32>
    tpu.vector_store %arg8[%c0_15, %c0_16], %18 {strides = array<i32>} : memref<8x128xf32, #tpu.memory_space<vmem>>, vector<8x128xf32>,
    return
  }
  func.func @transform_0(%arg0: i32) -> (i32, i32) {
    %c0_i32 = arith.constant 0 : i32
    %c0_i32_0 = arith.constant 0 : i32
    return %arg0, %c0_i32 : i32, i32
  }
  func.func @transform_1(%arg0: i32) -> (i32, i32) {
    %c0_i32 = arith.constant 0 : i32
    %c0_i32_0 = arith.constant 0 : i32
    %c0_i32_1 = arith.constant 0 : i32
    return %c0_i32, %c0_i32_0 : i32, i32
  }
  func.func @transform_2(%arg0: i32) -> (i32, i32) {
    %c0_i32 = arith.constant 0 : i32
    %c0_i32_0 = arith.constant 0 : i32
    %c0_i32_1 = arith.constant 0 : i32
    return %c0_i32, %c0_i32_0 : i32, i32
  }
  func.func @transform_3(%arg0: i32) -> (i32, i32) {
    %c0_i32 = arith.constant 0 : i32
    %c0_i32_0 = arith.constant 0 : i32
    %c0_i32_1 = arith.constant 0 : i32
    return %c0_i32, %c0_i32_0 : i32, i32
  }
  func.func @transform_4(%arg0: i32) -> (i32, i32) {
    %c0_i32 = arith.constant 0 : i32
    %c0_i32_0 = arith.constant 0 : i32
    %c0_i32_1 = arith.constant 0 : i32
    return %c0_i32, %c0_i32_0 : i32, i32
  }
  func.func @transform_5(%arg0: i32) -> (i32, i32) {
    %c0_i32 = arith.constant 0 : i32
    %c0_i32_0 = arith.constant 0 : i32
    %c0_i32_1 = arith.constant 0 : i32
    return %c0_i32, %c0_i32_0 : i32, i32
  }
  func.func @transform_6(%arg0: i32) -> (i32, i32) {
    %c0_i32 = arith.constant 0 : i32
    %c0_i32_0 = arith.constant 0 : i32
    %c0_i32_1 = arith.constant 0 : i32
    return %c0_i32, %c0_i32_0 : i32, i32
  }
  func.func @transform_7(%arg0: i32) -> (i32, i32) {
    %c0_i32 = arith.constant 0 : i32
    %c0_i32_0 = arith.constant 0 : i32
    return %arg0, %c0_i32 : i32, i32
  }
}

</mosaic_0001>

<bundles_post_ra>
// kernel: tpu_custom_call.1
= control target key start
LH: loop header
LB: loop body
LE: loop exit
PB: predicated region body
PF: predicated region fallthrough
CT: control target
= control target key end

     0   :  { %6 = vsyncpa [#allocation3], 0  ;;  %s103_s0 = inlined_call_operand.hbm [shape: f32[8,128], index: 0, kind: input, shape index: {}]   ;;  %s104_s1 = inlined_call_operand.hbm [shape: f32[8,128], index: 1, kind: output, shape index: {}]  }
   0x1   :  { %7 = vsyncpa [#allocation4], 0  ;;  %s85_s6 = smov [#allocation2]  }
   0x2   :  { %s14_s7 = sshll.u32 %s85_s6, 4  ;;  %s15_s7 = int_to_ptr.vmem [resolvable:$true] %s14_s7 }
   0x3   :  { %s49_s8 = scalar_lea.vmem %s15_s7, 128  ;;  %p54_p1 = scmp.lt.s32.totalorder %s15_s7, %s15_s7 }
   0x4   :  { %p50_p0 = scmp.ne.s32.totalorder %s15_s7, %s49_s8  ;;  %p55_p2 = scmp.lt.s32.totalorder %s49_s8, %s49_s8 }
   0x6   :  { %p56_p3 = por %p55_p2, %p54_p1 }
   0x8   :  { %p57_p4 = pnand %p56_p3, %p50_p0 }
   0xa   :  { %60 = shalt.err (!%p57_p4)
}
   0xb   :  { %17 = dma.hbm_to_vmem [thread:$0]  %s103_s0, 128, %s15_s7, [#allocation3]  }
   0xc   :  { %81 = dma.done.wait [#allocation3], 128  }
   0xd   :  { %82 = vsyncadd [#allocation3], 4294967168  ;;  %s86_s11 = smov [#allocation5]   ;;  %v21_v0 = vld [vmem:[#allocation2] sm:$0xff] }
   0xe   :  { %s30_s12 = sshll.u32 %s86_s11, 4  ;;  %v22_v1 = vadd.f32 1.0, %v21_v0  ;;  %s31_s12 = int_to_ptr.vmem [resolvable:$true] %s30_s12 }
   0xf   :  { %s61_s13 = scalar_lea.vmem %s31_s12, 128  ;;  %p66_p6 = scmp.lt.s32.totalorder %s31_s12, %s31_s12 }
  0x10   :  { %23 = vst [vmem:[#allocation5] sm:$0xff] %v22_v1  ;;  %p62_p5 = scmp.ne.s32.totalorder %s31_s12, %s61_s13  ;;  %p67_p7 = scmp.lt.s32.totalorder %s61_s13, %s61_s13 }
  0x12   :  { %p68_p8 = por %p67_p7, %p66_p6 }
  0x14   :  { %p69_p9 = pnand %p68_p8, %p62_p5 }
  0x16   :  { %72 = shalt.err (!%p69_p9)
}
  0x17   :  { %33 = dma.vmem_to_hbm [thread:$0]  %s31_s12, 128, %s104_s1, [#allocation4]  }
  0x18   :  { %83 = dma.done.wait [#allocation4], 128  }
  0x19   :  { %84 = vsyncadd [#allocation4], 4294967168 }
  0x1a   :  { %37 = vsyncpa [#allocation3], 1 }
  0x1b   :  { %38 = vsyncpa [#allocation4], 1 }

// kernel: _lambda_.1
= control target key start
LH: loop header
LB: loop body
LE: loop exit
PB: predicated region body
PF: predicated region fallthrough
CT: control target
= control target key end

     0   :  { %12 = vsyncpa [#allocation3], 0  ;;  %s1195_s0 = inlined_call_operand.vmem [shape: f32[16,128], index: 0, kind: input, shape index: {}]   ;;  %s1196_s1 = inlined_call_operand.hbm [shape: f32[128,128], index: 1, kind: input, shape index: {}]   ;;  %s1197_s2 = inlined_call_operand.vmem [shape: f32[1,128], index: 2, kind: input, shape index: {}]   ;;  %s1198_s3 = inlined_call_operand.hbm [shape: f32[128,128], index: 3, kind: input, shape index: {}]   ;;  %s1199_s4 = inlined_call_operand.vmem [shape: f32[1,128], index: 4, kind: input, shape index: {}]   ;;  %s1200_s5 = inlined_call_operand.hbm [shape: f32[128,128], index: 5, kind: input, shape index: {}]   ;;  %s1201_s6 = inlined_call_operand.vmem [shape: f32[1,128], index: 6, kind: input, shape index: {}]   ;;  %s1202_s7 = inlined_call_operand.vmem [shape: f32[16,128], index: 7, kind: output, shape index: {}]  }
   0x1   :  { %13 = vsyncpa [#allocation5], 0  ;;  %s1048_s24 = smov 0  }
   0x2 LB: > { %s1054_s25 = sadd.s32 4294967295, %s999_s24   ;;  %p688_p0 = scmp.ge.s32.totalorder %s999_s24, 1  ;;  %s999_s24 = sphi %s1048_s24, %s19_s24  }
   0x3   : > { %p202_p1 = scmp.lt.s32.totalorder %s999_s24, 3  ;;  %p882_p2 = scmp.eq.s32.totalorder %s1054_s25, 0 }
   0x4   : > { %s1001_s27 = smov [#allocation4]   ;;  %s1002_s29 = smov [#allocation2]  }
   0x5   : > { %p1059_p3 = pnand %p688_p0, %p202_p1  ;;  %s230_s28 = sshll.u32 %s1001_s27, 4  ;;  %s231_s28 = int_to_ptr.vmem [resolvable:$true] %s230_s28 }
   0x6   : > { %s214_s30 = sshll.u32 %s1002_s29, 4  ;;  %s1003_s9 = smov [#allocation6]   ;;  %s215_s30 = int_to_ptr.vmem [resolvable:$true] %s214_s30 }
   0x7   : > { %p872_p4 = pneg %p1059_p3  ;;  %s246_s10 = sshll.u32 %s1003_s9, 4  ;;  %s1071_s10 = int_to_ptr.vmem [resolvable:$true] %s246_s10 }
   0x8   : > { %s918_s11 = scalar_lea.vmem %s231_s28, 2048  ;;  %p926_p10 = scmp.lt.s32.totalorder %s231_s28, %s231_s28 }
   0x9   : > { %p1067_p5 = pnand %p882_p2, %p872_p4  ;;  %p919_p7 = scmp.ne.s32.totalorder %s231_s28, %s918_s11 }
   0xa   : > { %p927_p11 = scmp.lt.s32.totalorder %s918_s11, %s918_s11 }
   0xb   : > { %p909_p6 = pneg %p1067_p5 }
   0xc   : > { %p928_p12 = por %p927_p11, %p926_p10 }
   0xd   : > { %p921_p8 = pnand %p919_p7, %p909_p6 }
   0xf   : > { %p922_p9 = pneg %p921_p8 }
  0x11   : > { %p929_p13 = pnand %p928_p12, %p922_p9 }
  0x13   : > { %932 = shalt.err (!%p929_p13)
}
  0x14   : > { %s1004_s12 = smov 128   ;;  %s1005_s13 = smov 8  }
  0x15   : > { %878 = dma.hbm_to_vmem [thread:$0]  (!%p1067_p5), %s1198_s3, 2048, %s231_s28, [#allocation5], %s1004_s12, %s1004_s12, %s1005_s13  }
  0x16   : > { %s944_s16 = scalar_lea.vmem %s215_s30, 2048  ;;  %p952_p7 = scmp.lt.s32.totalorder %s215_s30, %s215_s30 }
  0x17   : > { %p945_p0 = scmp.ne.s32.totalorder %s215_s30, %s944_s16  ;;  %p953_p8 = scmp.lt.s32.totalorder %s944_s16, %s944_s16 }
  0x19   : > { %p947_p1 = pnand %p945_p0, %p909_p6  ;;  %p954_p10 = por %p953_p8, %p952_p7 }
  0x1b   : > { %p948_p4 = pneg %p947_p1 }
  0x1d   : > { %p955_p9 = pnand %p954_p10, %p948_p4 }
  0x1f   : > { %958 = shalt.err (!%p955_p9)
}
  0x20   : > { %875 = dma.hbm_to_vmem [thread:$0]  (!%p1067_p5), %s1196_s1, 2048, %s215_s30, [#allocation3], %s1004_s12, %s1004_s12, %s1005_s13  }
  0x21   : > { %s970_s19 = scalar_lea.vmem %s1071_s10, 2048  ;;  %p978_p0 = scmp.lt.s32.totalorder %s1071_s10, %s1071_s10 }
  0x22   : > { %p971_p11 = scmp.ne.s32.totalorder %s1071_s10, %s970_s19  ;;  %p979_p1 = scmp.lt.s32.totalorder %s970_s19, %s970_s19 }
  0x24   : > { %p973_p12 = pnand %p971_p11, %p909_p6  ;;  %p980_p4 = por %p979_p1, %p978_p0 }
  0x26   : > { %p974_p13 = pneg %p973_p12 }
  0x28   : > { %p981_p7 = pnand %p980_p4, %p974_p13 }
  0x2a   : > { %984 = shalt.err (!%p981_p7)
}
  0x2b   : > { %881 = dma.hbm_to_vmem [thread:$0]  (!%p1067_p5), %s1200_s5, 2048, %s1071_s10, [#allocation5], %s1004_s12, %s1004_s12, %s1005_s13  }
  0x2c   : > { %272 = sbr.rel (%p1059_p3) target bundleno = 702 (0x2be), region = 48 }
  0x31   : > { %990 = dma.done.wait (%p882_p2), [#allocation3], 2048  }
  0x32   : > { %992 = vsyncadd (%p882_p2), [#allocation3], 4294965248 }
  0x33   : > { %994 = dma.done.wait (%p882_p2), [#allocation5], 4096  }
  0x34   : > { %996 = vsyncadd (%p882_p2), [#allocation5], 4294963200  ;;  %v1006_v0 = vmov 0.0   ;;  %vm1007_vm0 = vmmov 0   ;;  %v333_v1 = vld [vmem:[#allocation2 + $0x78] sm:$0xff]  ;;  %v332_v2 = vld [vmem:[#allocation2 + $0x70] sm:$0xff] }
  0x35   : > { %755 = vmatprep.subr.mxu0 %v1006_v0  ;;  %787 = vmatprep.mubr.msk.f32.mxu0 %vm1007_vm0, %v1006_v0  ;;  %v331_v3 = vld [vmem:[#allocation2 + $0x68] sm:$0xff]  ;;  %v330_v4 = vld [vmem:[#allocation2 + $0x60] sm:$0xff]  ;;  %v349_v5 = vld [vmem:[#allocation4 + $0x78] sm:$0xff]  ;;  %p310_p2 = scmp.lt.s32.totalorder %s1054_s25, 1 }
  0x36   : > { %790 = vmatprep.subr.mxu1 %v1006_v0  ;;  %822 = vmatprep.mubr.msk.f32.mxu1 %vm1007_vm0, %v1006_v0  ;;  %v329_v6 = vld [vmem:[#allocation2 + $0x58] sm:$0xff]  ;;  %v348_v7 = vld [vmem:[#allocation4 + $0x70] sm:$0xff]  ;;  %v347_v8 = vld [vmem:[#allocation4 + $0x68] sm:$0xff] }
  0x37   : > { %756 = vmatpush3.msra.mxu0 %v333_v1  ;;  %791 = vmatpush3.msra.mxu1 %v349_v5  ;;  %v328_v9 = vld [vmem:[#allocation2 + $0x50] sm:$0xff]  ;;  %v346_v10 = vld [vmem:[#allocation4 + $0x60] sm:$0xff]  ;;  %v327_v11 = vld [vmem:[#allocation2 + $0x48] sm:$0xff]  ;;  %s1206_s25 = smov (!%p310_p2, %s1054_s25), 1 }
  0x38   : > { %757 = vmatprep.subr.mxu0 %v1006_v0  ;;  %792 = vmatprep.subr.mxu1 %v1006_v0  ;;  %v345_v12 = vld [vmem:[#allocation4 + $0x58] sm:$0xff]  ;;  %v326_v13 = vld [vmem:[#allocation2 + $0x40] sm:$0xff]  ;;  %v344_v14 = vld [vmem:[#allocation4 + $0x50] sm:$0xff]  ;;  %s697_s22 = sshll.u32 %s1206_s25, 3 }
  0x39   : > { %758 = vmatpush3.msra.mxu0 %v332_v2  ;;  %793 = vmatpush3.msra.mxu1 %v348_v7  ;;  %v325_v15 = vld [vmem:[#allocation2 + $0x38] sm:$0xff]  ;;  %v343_v16 = vld [vmem:[#allocation4 + $0x48] sm:$0xff]  ;;  %v324_v17 = vld [vmem:[#allocation2 + $0x30] sm:$0xff]  ;;  %s313_s27 = scalar_lea.vmem %s1195_s0, %s697_s22  ;;  %s317_s13 = scalar_lea.vmem %s1202_s7, %s697_s22 }
  0x3a   : > { %759 = vmatprep.subr.mxu0 %v1006_v0  ;;  %794 = vmatprep.subr.mxu1 %v1006_v0  ;;  %v323_v18 = vld [vmem:[#allocation2 + $0x28] sm:$0xff]  ;;  %v322_v19 = vld [vmem:[#allocation2 + $0x20] sm:$0xff]  ;;  %v321_v20 = vld [vmem:[#allocation2 + $0x18] sm:$0xff] }
  0x3b   : > { %760 = vmatpush3.msra.mxu0 %v331_v3  ;;  %795 = vmatpush3.msra.mxu1 %v347_v8  ;;  %v320_v21 = vld [vmem:[#allocation2 + $0x10] sm:$0xff]  ;;  %v319_v22 = vld [vmem:[#allocation2 + $0x8] sm:$0xff]  ;;  %v318_v23 = vld [vmem:[#allocation2] sm:$0xff] }
  0x3c   : > { %761 = vmatprep.subr.mxu0 %v1006_v0  ;;  %796 = vmatprep.subr.mxu1 %v1006_v0  ;;  %v369_v24 = vld [vmem:[%s313_s27] sm:$0xff]  ;;  %v341_v26 = vld [vmem:[#allocation4 + $0x38] sm:$0xff]  ;;  %v340_v27 = vld [vmem:[#allocation4 + $0x30] sm:$0xff] }
  0x3d   : > { %762 = vmatpush3.msra.mxu0 %v330_v4  ;;  %797 = vmatpush3.msra.mxu1 %v346_v10  ;;  %v342_v25 = vld [vmem:[#allocation4 + $0x40] sm:$0xff]  ;;  %v339_v28 = vld [vmem:[#allocation4 + $0x28] sm:$0xff]  ;;  %v337_v30 = vld [vmem:[#allocation4 + $0x18] sm:$0xff] }
  0x3e   : > { %763 = vmatprep.subr.mxu0 %v1006_v0  ;;  %798 = vmatprep.subr.mxu1 %v1006_v0  ;;  %v338_v29 = vld [vmem:[#allocation4 + $0x20] sm:$0xff]  ;;  %v336_v31 = vld [vmem:[#allocation4 + $0x10] sm:$0xff]  ;;  %v335_v32 = vld [vmem:[#allocation4 + $0x8] sm:$0xff] }
  0x3f   : > { %764 = vmatpush3.msra.mxu0 %v329_v6  ;;  %799 = vmatpush3.msra.mxu1 %v345_v12  ;;  %v334_v33 = vld [vmem:[#allocation4] sm:$0xff]  ;;  %v365_v34 = vld [vmem:[#allocation6 + $0x78] sm:$0xff]  ;;  %v364_v35 = vld [vmem:[#allocation6 + $0x70] sm:$0xff] }
  0x40   : > { %765 = vmatprep.subr.mxu0 %v1006_v0  ;;  %800 = vmatprep.subr.mxu1 %v1006_v0  ;;  %v363_v36 = vld [vmem:[#allocation6 + $0x68] sm:$0xff]  ;;  %v362_v37 = vld [vmem:[#allocation6 + $0x60] sm:$0xff]  ;;  %v361_v38 = vld [vmem:[#allocation6 + $0x58] sm:$0xff] }
  0x41   : > { %766 = vmatpush3.msra.mxu0 %v328_v9  ;;  %801 = vmatpush3.msra.mxu1 %v344_v14  ;;  %v360_v39 = vld [vmem:[#allocation6 + $0x50] sm:$0xff]  ;;  %v699_v40 = vld [vmem:[%s1197_s2] ss:$0 sm:$0xff]  ;;  %v359_v45 = vld [vmem:[#allocation6 + $0x48] sm:$0xff] }
  0x42   : > { %767 = vmatprep.subr.mxu0 %v1006_v0  ;;  %802 = vmatprep.subr.mxu1 %v1006_v0  ;;  %v358_v46 = vld [vmem:[#allocation6 + $0x40] sm:$0xff]  ;;  %v357_v47 = vld [vmem:[#allocation6 + $0x38] sm:$0xff]  ;;  %v356_v48 = vld [vmem:[#allocation6 + $0x30] sm:$0xff] }
  0x43   : > { %768 = vmatpush3.msra.mxu0 %v327_v11  ;;  %803 = vmatpush3.msra.mxu1 %v343_v16  ;;  %v355_v49 = vld [vmem:[#allocation6 + $0x28] sm:$0xff]  ;;  %v354_v50 = vld [vmem:[#allocation6 + $0x20] sm:$0xff]  ;;  %v353_v51 = vld [vmem:[#allocation6 + $0x18] sm:$0xff] }
  0x44   : > { %769 = vmatprep.subr.mxu0 %v1006_v0  ;;  %804 = vmatprep.subr.mxu1 %v1006_v0  ;;  %v352_v52 = vld [vmem:[#allocation6 + $0x10] sm:$0xff]  ;;  %v351_v53 = vld [vmem:[#allocation6 + $0x8] sm:$0xff]  ;;  %v350_v54 = vld [vmem:[#allocation6] sm:$0xff] }
  0x45   : > { %770 = vmatpush3.msra.mxu0 %v326_v13  ;;  %805 = vmatpush3.msra.mxu1 %v342_v25  ;;  %v700_v55 = vld [vmem:[%s1199_s4] ss:$0 sm:$0xff] }
  0x46   : > { %771 = vmatprep.subr.mxu0 %v1006_v0  ;;  %806 = vmatprep.subr.mxu1 %v1006_v0  ;;  %v701_v61 = vld [vmem:[%s1201_s6] ss:$0 sm:$0xff] }
  0x47   : > { %772 = vmatpush3.msra.mxu0 %v325_v15  ;;  %807 = vmatpush3.msra.mxu1 %v341_v26 }
  0x48   : > { %773 = vmatprep.subr.mxu0 %v1006_v0  ;;  %808 = vmatprep.subr.mxu1 %v1006_v0 }
  0x49   : > { %774 = vmatpush3.msra.mxu0 %v324_v17  ;;  %809 = vmatpush3.msra.mxu1 %v340_v27 }
  0x4a   : > { %775 = vmatprep.subr.mxu0 %v1006_v0  ;;  %810 = vmatprep.subr.mxu1 %v1006_v0 }
  0x4b   : > { %776 = vmatpush3.msra.mxu0 %v323_v18  ;;  %811 = vmatpush3.msra.mxu1 %v339_v28 }
  0x4c   : > { %777 = vmatprep.subr.mxu0 %v1006_v0  ;;  %812 = vmatprep.subr.mxu1 %v1006_v0 }
  0x4d   : > { %778 = vmatpush3.msra.mxu0 %v322_v19  ;;  %813 = vmatpush3.msra.mxu1 %v338_v29 }
  0x4e   : > { %779 = vmatprep.subr.mxu0 %v1006_v0  ;;  %814 = vmatprep.subr.mxu1 %v1006_v0 }
  0x4f   : > { %780 = vmatpush3.msra.mxu0 %v321_v20  ;;  %815 = vmatpush3.msra.mxu1 %v337_v30 }
  0x50   : > { %781 = vmatprep.subr.mxu0 %v1006_v0  ;;  %816 = vmatprep.subr.mxu1 %v1006_v0 }
  0x51   : > { %782 = vmatpush3.msra.mxu0 %v320_v21  ;;  %817 = vmatpush3.msra.mxu1 %v336_v31 }
  0x52   : > { %783 = vmatprep.subr.mxu0 %v1006_v0  ;;  %818 = vmatprep.subr.mxu1 %v1006_v0 }
  0x53   : > { %784 = vmatpush3.msra.mxu0 %v319_v22  ;;  %819 = vmatpush3.msra.mxu1 %v335_v32 }
  0x54   : > { %785 = vmatprep.subr.mxu0 %v1006_v0  ;;  %820 = vmatprep.subr.mxu1 %v1006_v0 }
  0x55   : > { %786 = vmatpush3.msra.mxu0 %v318_v23  ;;  %821 = vmatpush3.msra.mxu1 %v334_v33 }
  0x56   : > { %788 = vmatmul.mubr.f32.vlgmr.msra.gmra.mxu0 %v369_v24  ;;  %825 = vmatprep.subr.mxu0 %v1006_v0 }
  0x57   : > { %857 = vmatprep.mubr.msk.f32.mxu0 %vm1007_vm0, %v1006_v0  ;;  %826 = vmatpush3.msra.mxu0 %v365_v34 }
  0x58   : > { %827 = vmatprep.subr.mxu0 %v1006_v0 }
  0x59   : > { %828 = vmatpush3.msra.mxu0 %v364_v35 }
  0x5a   : > { %829 = vmatprep.subr.mxu0 %v1006_v0 }
  0x5b   : > { %830 = vmatpush3.msra.mxu0 %v363_v36 }
  0x5c   : > { %831 = vmatprep.subr.mxu0 %v1006_v0 }
  0x5d   : > { %832 = vmatpush3.msra.mxu0 %v362_v37 }
  0x5e   : > { %833 = vmatprep.subr.mxu0 %v1006_v0 }
  0x5f   : > { %834 = vmatpush3.msra.mxu0 %v361_v38 }
  0x60   : > { %835 = vmatprep.subr.mxu0 %v1006_v0 }
  0x61   : > { %836 = vmatpush3.msra.mxu0 %v360_v39 }
  0x62   : > { %837 = vmatprep.subr.mxu0 %v1006_v0 }
  0x63   : > { %838 = vmatpush3.msra.mxu0 %v359_v45 }
  0x64   : > { %839 = vmatprep.subr.mxu0 %v1006_v0 }
  0x65   : > { %840 = vmatpush3.msra.mxu0 %v358_v46 }
  0x66   : > { %841 = vmatprep.subr.mxu0 %v1006_v0 }
  0x67   : > { %842 = vmatpush3.msra.mxu0 %v357_v47 }
  0x68   : > { %843 = vmatprep.subr.mxu0 %v1006_v0 }
  0x69   : > { %844 = vmatpush3.msra.mxu0 %v356_v48 }
  0x6a   : > { %845 = vmatprep.subr.mxu0 %v1006_v0 }
  0x6b   : > { %846 = vmatpush3.msra.mxu0 %v355_v49 }
  0x6c   : > { %847 = vmatprep.subr.mxu0 %v1006_v0 }
  0x6d   : > { %848 = vmatpush3.msra.mxu0 %v354_v50 }
  0x6e   : > { %849 = vmatprep.subr.mxu0 %v1006_v0 }
  0x6f   : > { %850 = vmatpush3.msra.mxu0 %v353_v51 }
  0x70   : > { %851 = vmatprep.subr.mxu0 %v1006_v0 }
  0x71   : > { %852 = vmatpush3.msra.mxu0 %v352_v52 }
  0x72   : > { %853 = vmatprep.subr.mxu0 %v1006_v0 }
  0x73   : > { %854 = vmatpush3.msra.mxu0 %v351_v53 }
  0x74   : > { %855 = vmatprep.subr.mxu0 %v1006_v0 }
  0x75   : > { %856 = vmatpush3.msra.mxu0 %v350_v54 }
 0x116   : > { %v442_v41 = vpop.f32.mrf.mxu0 }
 0x117   : > { %v443_v42 = vadd.f32 %v699_v40, %v442_v41 }
 0x118   : > { %v789_v43 = vpop.f32.mrf.mxu0 }
 0x119   : > { %903 = vtanh.f32 %v443_v42 }
 0x126   : > { %v904_v44 = vpop.eup %903 }
 0x127   : > { %823 = vmatmul.mubr.f32.vlgmr.msra.gmra.mxu1 %v904_v44 }
 0x1e7   : > { %v519_v56 = vpop.f32.mrf.mxu1 }
 0x1e8   : > { %v520_v57 = vadd.f32 %v700_v55, %v519_v56 }
 0x1e9   : > { %v824_v58 = vpop.f32.mrf.mxu1 }
 0x1ea   : > { %905 = vtanh.f32 %v520_v57 }
 0x1f7   : > { %v906_v59 = vpop.eup %905 }
 0x1f8   : > { %v524_v60 = vadd.f32 %v906_v59, %v904_v44 }
 0x1fa   : > { %858 = vmatmul.mubr.f32.vlgmr.msra.gmra.mxu0 %v524_v60 }
 0x2ba   : > { %v597_v62 = vpop.f32.mrf.mxu0 }
 0x2bb   : > { %v598_v63 = vadd.f32 %v701_v61, %v597_v62 }
 0x2bc   : > { %v859_v0 = vpop.f32.mrf.mxu0 }
 0x2bd   : > { %601 = vst [vmem:[%s317_s13] sm:$0xff] %v598_v63 }
 0x2be PF: > { %s19_s24 = sadd.s32 1, %s999_s24  }
 0x2bf   : > { %p16_p3 = scmp.ge.s32.totalorder %s19_s24, 4  }
 0x2c1   :  { %18 = sbr.rel (!%p16_p3) target bundleno = 2 (0x2), region = 91 }
 0x2c6   :  { %621 = vsyncpa [#allocation3], 1 }
 0x2c7   :  { %623 = vsyncpa [#allocation3 + $0x1], 1 }
 0x2c8   :  { %624 = vsyncpa [#allocation5], 1 }

</bundles_post_ra>
